<compile_context>
chip_gen: v6e
topology: v6e:2x2x1
jax: 0.10.0
libtpu: 0.0.40
codegen_flags: <defaults>
</compile_context>

<pallas_src>
import functools

import jax
import jax.numpy as jnp
from jax import lax
from jax.experimental import pallas as pl
from jax.experimental.pallas import tpu as pltpu


def _vmem_limit_bytes():
    # Generation-aware scoped-VMEM limit: ~48 MiB on v7x (64 MiB/TC), ~96 MiB on
    # v5e/v6e (128 MiB/TC), leaving headroom for compiler-internal scratch.
    try:
        return int(pltpu.get_tpu_info().vmem_capacity_bytes * 3 // 4)
    except Exception:
        return 48 * 1024 * 1024


# ---------------------------------------------------------------------------
# Kernel 1: in-projection linear  y = x @ W + b  with W already in (Din, Dout)
# NN orientation (pre-transposed once in the wrapper -> no in-kernel transpose).
# Row-tiled "parallel" grid; weight/bias blocks resident (constant index_map).
# Operands may be bf16 (cast in the wrapper); accumulation is f32.
# ---------------------------------------------------------------------------
def _linear_kernel(x_ref, w_ref, b_ref, o_ref):
    o_ref[...] = (
        jnp.dot(x_ref[...], w_ref[...], preferred_element_type=jnp.float32)
        + b_ref[...]
    )


def pallas_linear(x, w_nn, bias, *, row_tile=256):
    """x: (N, Din); w_nn: (Din, Dout) NN layout; bias: (Dout,) f32."""
    N, Din = x.shape
    Dout = w_nn.shape[1]
    tn = N if N <= row_tile else row_tile
    b2 = bias.reshape(1, Dout).astype(jnp.float32)
    # TODO(synk): for very large Din/Dout, additionally tile Dout (or K with an
    # accumulator) so the resident weight block fits v7x's 64 MiB VMEM.
    return pl.pallas_call(
        _linear_kernel,
        out_shape=jax.ShapeDtypeStruct((N, Dout), jnp.float32),
        grid=(pl.cdiv(N, tn),),
        in_specs=[
            pl.BlockSpec((tn, Din), lambda i: (i, 0)),
            pl.BlockSpec((Din, Dout), lambda i: (0, 0)),   # resident weight
            pl.BlockSpec((1, Dout), lambda i: (0, 0)),     # resident bias
        ],
        out_specs=pl.BlockSpec((tn, Dout), lambda i: (i, 0)),
        compiler_params=pltpu.CompilerParams(
            dimension_semantics=("parallel",),
            vmem_limit_bytes=_vmem_limit_bytes(),
        ),
    )(x, w_nn, b2)


# ---------------------------------------------------------------------------
# Kernel 2: fused attention + positional-similarity recompute + out_proj.
# Grid = (batch, q_tile, head); head is the innermost "arbitrary" reduction axis;
# the (tq,E) output block and (tq,T) averaged-weights block are f32 accumulators
# resident across the head axis (init at h==0 with the out_proj bias / zeros).
# ---------------------------------------------------------------------------
def _fused_attn_kernel(q_ref, k_ref, v_ref, peq_ref, pek_ref, wout_ref, bout_ref,
                       out_ref, wavg_ref, *, num_heads, compute_dtype):
    h = pl.program_id(2)
    cdt = compute_dtype

    @pl.when(h == 0)
    def _init():
        out_ref[0] = jnp.broadcast_to(bout_ref[...], out_ref.shape[1:])  # out_proj bias
        wavg_ref[0] = jnp.zeros(wavg_ref.shape[1:], jnp.float32)

    # --- CustomAttn_Kernel('cosine_similarity') + softmax, recomputed from the tiny
    #     (P,T) pos-embed block selected by the index_map: no (B,T,T) HBM tensor,
    #     no VMEM-resident psim.  (For exp/EUP-bound cases on v6e, precompute psim
    #     and stream (tq,T) slices instead.)
    peq = peq_ref[0].astype(jnp.float32)                                  # (tq, P)
    pek = pek_ref[0].astype(jnp.float32)                                  # (P, T)
    l1q = jnp.maximum(jnp.sum(jnp.abs(peq), axis=-1, keepdims=True), 1e-12)
    l1k = jnp.maximum(jnp.sum(jnp.abs(pek), axis=0, keepdims=True), 1e-12)
    sim = jnp.dot(peq / l1q, pek / l1k, preferred_element_type=jnp.float32)  # (tq, T)
    sm = jnp.max(sim, axis=-1, keepdims=True)
    se = jnp.exp(sim - sm)
    psim = se * (1.0 / jnp.sum(se, axis=-1, keepdims=True))               # exact softmax

    # --- attention scores for this head (q already carries head_dim**-0.5 scaling)
    scores = lax.dot_general(q_ref[0, 0], k_ref[0, 0],
                             (((1,), (1,)), ((), ())),
                             preferred_element_type=jnp.float32)          # (tq, T)
    scores = scores * psim
    m = jnp.max(scores, axis=-1, keepdims=True)
    e = jnp.exp(scores - m)
    w = e * (1.0 / jnp.sum(e, axis=-1, keepdims=True))                    # exact softmax
    # dropout(p=0.0) is the identity.

    wavg_ref[0] += w * (1.0 / num_heads)

    head_out = jnp.dot(w.astype(cdt), v_ref[0, 0],
                       preferred_element_type=jnp.float32)                # (tq, hd)
    # fused out_proj: accumulate this head's (tq, E) contribution.
    out_ref[0] += jnp.dot(head_out.astype(cdt), wout_ref[0],
                          preferred_element_type=jnp.float32)             # (tq, E)


def _pick_q_tile(T, max_tile=256):
    if T <= max_tile:
        return T
    for t in (256, 128, 64, 32, 16, 8):
        if T % t == 0:
            return t
    return T


def pallas_fused_attention(q4, k4, v4, pe_qT, pe, wout_h, bout, *, q_tile, compute_dtype):
    B, H, T, hd = q4.shape
    E = H * hd
    P = pe.shape[1]
    assert T % q_tile == 0
    nqt = T // q_tile
    kernel = functools.partial(_fused_attn_kernel, num_heads=H, compute_dtype=compute_dtype)
    return pl.pallas_call(
        kernel,
        out_shape=(
            jax.ShapeDtypeStruct((B, T, E), jnp.float32),   # attn output (batch-major, out_proj applied)
            jax.ShapeDtypeStruct((B, T, T), jnp.float32),   # head-averaged attention weights
        ),
        grid=(B, nqt, H),                                   # head axis = innermost reduction
        in_specs=[
            pl.BlockSpec((1, 1, q_tile, hd), lambda b, qi, h: (b, h, qi, 0)),          # q tile
            pl.BlockSpec((1, 1, T, hd), lambda b, qi, h: (b, h, 0, 0)),                # k (all keys)
            pl.BlockSpec((1, 1, T, hd), lambda b, qi, h: (b, h, 0, 0)),                # v (all keys)
            pl.BlockSpec((1, q_tile, P), lambda b, qi, h: ((b * H + h) % B, qi, 0)),   # pe^T q rows
            pl.BlockSpec((1, P, T), lambda b, qi, h: ((b * H + h) % B, 0, 0)),         # pe all cols
            pl.BlockSpec((1, hd, E), lambda b, qi, h: (h, 0, 0)),                      # out_proj slab
            pl.BlockSpec((1, E), lambda b, qi, h: (0, 0)),                             # out_proj bias
        ],
        out_specs=(
            pl.BlockSpec((1, q_tile, E), lambda b, qi, h: (b, qi, 0)),
            pl.BlockSpec((1, q_tile, T), lambda b, qi, h: (b, qi, 0)),
        ),
        compiler_params=pltpu.CompilerParams(
            dimension_semantics=("parallel", "parallel", "arbitrary"),
            vmem_limit_bytes=_vmem_limit_bytes(),
        ),
    )(q4, k4, v4, pe_qT, pe, wout_h, bout)


# ---------------------------------------------------------------------------
# Full forward pass (thin glue in JAX; the heavy lifting is in the two kernels).
# compute_dtype=jnp.bfloat16 -> native MXU path (f32 accumulate);
# compute_dtype=jnp.float32  -> exact fp32 reference numerics.
# ---------------------------------------------------------------------------
def mha_custom_attn_forward(query, pos_embed, params, num_heads,
                            compute_dtype=jnp.bfloat16):
    T, B, E = query.shape
    H = num_heads
    hd = E // H
    assert hd * H == E
    scaling = float(hd) ** -0.5
    cdt = compute_dtype

    # Fold the head_dim**-0.5 query scaling into the q rows of in_proj (free),
    # and pre-transpose both projection weights into MXU-native NN orientation.
    scale_col = jnp.concatenate(
        [jnp.full((E,), scaling, jnp.float32), jnp.ones((2 * E,), jnp.float32)])
    w_in_nn = (params["in_proj_weight"] * scale_col[:, None]).T       # (E, 3E)
    b_in = params["in_proj_bias"] * scale_col                         # (3E,)
    wout_h = params["out_proj_weight"].T.reshape(H, hd, E)            # per-head (hd, E) slabs
    bout = params["out_proj_bias"].reshape(1, E).astype(jnp.float32)

    # in_proj over `query` only (reference semantics: key/value args are ignored).
    x = query.transpose(1, 0, 2).reshape(B * T, E)                    # batch-major rows
    proj = pallas_linear(x.astype(cdt), w_in_nn.astype(cdt), b_in)    # (B*T, 3E) f32

    # (B*T,3E) -> head-major q/k/v (B,H,T,hd): one XLA relayout, so the kernel never
    # lane-slices heads at sub-128 offsets.
    qkv = proj.reshape(B, T, 3, H, hd).transpose(2, 0, 3, 1, 4).astype(cdt)  # (3,B,H,T,hd)
    q4, k4, v4 = qkv[0], qkv[1], qkv[2]

    pe = pos_embed.astype(jnp.float32)                                # (B, P, T)
    pe_qT = pe.transpose(0, 2, 1)                                     # (B, T, P)

    attn_bte, attn_w_avg = pallas_fused_attention(
        q4, k4, v4, pe_qT, pe, wout_h.astype(cdt), bout,
        q_tile=_pick_q_tile(T), compute_dtype=cdt)

    attn_output = attn_bte.transpose(1, 0, 2)                         # back to (T, B, E)
    return attn_output, attn_w_avg


# ---------------------------------------------------------------------------
# Pure-JAX reference (mirrors the PyTorch forward) for a correctness smoke test.
# ---------------------------------------------------------------------------
def reference_forward(query, pos_embed, params, num_heads):
    T, B, E = query.shape
    H = num_heads
    hd = E // H
    scaling = float(hd) ** -0.5
    proj = query @ params["in_proj_weight"].T + params["in_proj_bias"]     # (T,B,3E)
    q, k, v = jnp.split(proj, 3, axis=-1)
    q = (q * scaling).reshape(T, B * H, hd).transpose(1, 0, 2)
    k = k.reshape(T, B * H, hd).transpose(1, 0, 2)
    v = v.reshape(T, B * H, hd).transpose(1, 0, 2)
    w = jnp.einsum("bik,bjk->bij", q, k)                                   # (B*H,T,T)
    pe = pos_embed / jnp.maximum(
        jnp.sum(jnp.abs(pos_embed), axis=1, keepdims=True), 1e-12)
    psim = jax.nn.softmax(jnp.einsum("bpi,bpj->bij", pe, pe), axis=-1)     # (B,T,T)
    w = jax.nn.softmax(w * jnp.tile(psim, (H, 1, 1)), axis=-1)
    attn = jnp.einsum("bij,bjd->bid", w, v)                                # (B*H,T,hd)
    attn = attn.transpose(1, 0, 2).reshape(T, B, E)
    attn = attn @ params["out_proj_weight"].T + params["out_proj_bias"]
    w_avg = w.reshape(B, H, T, T).sum(axis=1) / H
    return attn, w_avg


# ---------------------------------------------------------------------------
# Deterministic parameter init (xavier_uniform weights, zero biases).
# ---------------------------------------------------------------------------
def init_params(key, embed_dim):
    E = embed_dim
    k1, k2 = jax.random.split(key, 2)
    b_in = (6.0 / (E + 3 * E)) ** 0.5
    b_out = (6.0 / (E + E)) ** 0.5
    return {
        "in_proj_weight": jax.random.uniform(k1, (3 * E, E), jnp.float32, -b_in, b_in),
        "in_proj_bias": jnp.zeros((3 * E,), jnp.float32),
        "out_proj_weight": jax.random.uniform(k2, (E, E), jnp.float32, -b_out, b_out),
        "out_proj_bias": jnp.zeros((E,), jnp.float32),
    }


if __name__ == "__main__":
    T, B, E, H = 8, 2, 32, 4        # tgt_len, batch, embed_dim, num_heads
    P = 32                          # pos_embed channel dim

    key = jax.random.PRNGKey(0)
    kq, kk, kv, kp, kw = jax.random.split(key, 5)
    query = jax.random.normal(kq, (T, B, E), jnp.float32)
    key_in = jax.random.normal(kk, (T, B, E), jnp.float32)    # ignored by the reference forward
    value_in = jax.random.normal(kv, (T, B, E), jnp.float32)  # ignored by the reference forward
    pos_embed = jax.random.normal(kp, (B, P, T), jnp.float32)

    params = init_params(kw, E)

    fwd = jax.jit(mha_custom_attn_forward, static_argnums=(3,))
    attn_output, attn_weights_avg = fwd(query, pos_embed, params, H)
    jax.block_until_ready((attn_output, attn_weights_avg))

    assert attn_output.shape == (T, B, E)
    assert attn_weights_avg.shape == (B, T, T)
    assert bool(jnp.all(jnp.isfinite(attn_output)))
    assert bool(jnp.all(jnp.isfinite(attn_weights_avg)))

    # Smoke-test against the pure-JAX reference (loose tol: bf16 MXU operands).
    ref_out, ref_wavg = reference_forward(query, pos_embed, params, H)
    d_out = float(jnp.max(jnp.abs(attn_output - ref_out)))
    d_w = float(jnp.max(jnp.abs(attn_weights_avg - ref_wavg)))
    assert d_out < 5e-2, f"attn_output max abs diff {d_out}"
    assert d_w < 5e-2, f"attn_weights_avg max abs diff {d_w}"

    print("KERNEL_OK")
</pallas_src>

<mosaic_0001>
module attributes {stable_mosaic.version = 11 : i64} {
  func.func @_linear_kernel(%arg0: i32, %arg1: memref<16x32xbf16, #tpu.memory_space<vmem>>, %arg2: memref<32x96xbf16, #tpu.memory_space<vmem>>, %arg3: memref<1x96xf32, #tpu.memory_space<vmem>>, %arg4: memref<16x96xf32, #tpu.memory_space<vmem>>) attributes {dimension_semantics = [#tpu.dimension_semantics<parallel>], iteration_bounds = array<i64: 1>, scalar_prefetch = 0 : i64, scratch_operands = 0 : i64, tpu.core_type = #tpu.core_type<tc>, window_params = [{transform_indices = @transform_0, window_bounds = array<i64: 16, 32>}, {pipeline_mode = #tpu.pipeline_mode<synchronous>, transform_indices = @transform_1, window_bounds = array<i64: 32, 96>}, {pipeline_mode = #tpu.pipeline_mode<synchronous>, transform_indices = @transform_2, window_bounds = array<i64: 1, 96>}, {transform_indices = @transform_3, window_bounds = array<i64: 16, 96>}]} {
    %c0 = arith.constant 0 : index
    %c0_0 = arith.constant 0 : index
    %0 = vector.load %arg1[%c0, %c0_0] : memref<16x32xbf16, #tpu.memory_space<vmem>>, vector<16x32xbf16>
    %c0_1 = arith.constant 0 : index
    %c0_2 = arith.constant 0 : index
    %1 = vector.load %arg2[%c0_1, %c0_2] : memref<32x96xbf16, #tpu.memory_space<vmem>>, vector<32x96xbf16>
    %cst = arith.constant dense<0.000000e+00> : vector<16x96xf32>
    %2 = tpu.matmul %0, %1, %cst {dimension_numbers = #tpu.dot_dimension_numbers<[1], [0], [0], [1], [0, 0, 1, 1], [], []>} : vector<16x32xbf16>, vector<32x96xbf16>, vector<16x96xf32> -> vector<16x96xf32>
    %c0_3 = arith.constant 0 : index
    %c0_4 = arith.constant 0 : index
    %3 = vector.load %arg3[%c0_3, %c0_4] : memref<1x96xf32, #tpu.memory_space<vmem>>, vector<1x96xf32>
    %4 = vector.broadcast %3 : vector<1x96xf32> to vector<16x96xf32>
    %5 = arith.addf %2, %4 : vector<16x96xf32>
    %c0_5 = arith.constant 0 : index
    %c0_6 = arith.constant 0 : index
    %6 = vector.load %arg4[%c0_5, %c0_6] : memref<16x96xf32, #tpu.memory_space<vmem>>, vector<16x96xf32>
    tpu.vector_store %arg4[%c0_5, %c0_6], %5 {strides = array<i32>} : memref<16x96xf32, #tpu.memory_space<vmem>>, vector<16x96xf32>,
    return
  }
  func.func @transform_0(%arg0: i32) -> (i32, i32) {
    %c0_i32 = arith.constant 0 : i32
    %c0_i32_0 = arith.constant 0 : i32
    return %arg0, %c0_i32 : i32, i32
  }
  func.func @transform_1(%arg0: i32) -> (i32, i32) {
    %c0_i32 = arith.constant 0 : i32
    %c0_i32_0 = arith.constant 0 : i32
    %c0_i32_1 = arith.constant 0 : i32
    return %c0_i32, %c0_i32_0 : i32, i32
  }
  func.func @transform_2(%arg0: i32) -> (i32, i32) {
    %c0_i32 = arith.constant 0 : i32
    %c0_i32_0 = arith.constant 0 : i32
    %c0_i32_1 = arith.constant 0 : i32
    return %c0_i32, %c0_i32_0 : i32, i32
  }
  func.func @transform_3(%arg0: i32) -> (i32, i32) {
    %c0_i32 = arith.constant 0 : i32
    %c0_i32_0 = arith.constant 0 : i32
    return %arg0, %c0_i32 : i32, i32
  }
}

module attributes {stable_mosaic.version = 11 : i64} {
  func.func @_fused_attn_kernel(%arg0: i32, %arg1: i32, %arg2: i32, %arg3: memref<1x1x8x8xbf16, #tpu.memory_space<vmem>>, %arg4: memref<1x1x8x8xbf16, #tpu.memory_space<vmem>>, %arg5: memref<1x1x8x8xbf16, #tpu.memory_space<vmem>>, %arg6: memref<1x8x32xf32, #tpu.memory_space<vmem>>, %arg7: memref<1x32x8xf32, #tpu.memory_space<vmem>>, %arg8: memref<1x8x32xbf16, #tpu.memory_space<vmem>>, %arg9: memref<1x32xf32, #tpu.memory_space<vmem>>, %arg10: memref<1x8x32xf32, #tpu.memory_space<vmem>>, %arg11: memref<1x8x8xf32, #tpu.memory_space<vmem>>) attributes {dimension_semantics = [#tpu.dimension_semantics<parallel>, #tpu.dimension_semantics<parallel>, #tpu.dimension_semantics<arbitrary>], iteration_bounds = array<i64: 2, 1, 4>, scalar_prefetch = 0 : i64, scratch_operands = 0 : i64, tpu.core_type = #tpu.core_type<tc>, window_params = [{transform_indices = @transform_0, window_bounds = array<i64: 1, 1, 8, 8>}, {transform_indices = @transform_1, window_bounds = array<i64: 1, 1, 8, 8>}, {transform_indices = @transform_2, window_bounds = array<i64: 1, 1, 8, 8>}, {transform_indices = @transform_3, window_bounds = array<i64: 1, 8, 32>}, {transform_indices = @transform_4, window_bounds = array<i64: 1, 32, 8>}, {transform_indices = @transform_5, window_bounds = array<i64: 1, 8, 32>}, {pipeline_mode = #tpu.pipeline_mode<synchronous>, transform_indices = @transform_6, window_bounds = array<i64: 1, 32>}, {transform_indices = @transform_7, window_bounds = array<i64: 1, 8, 32>}, {transform_indices = @transform_8, window_bounds = array<i64: 1, 8, 8>}]} {
    %c0_i32 = arith.constant 0 : i32
    %0 = arith.cmpi eq, %arg2, %c0_i32 : i32
    %1 = arith.extui %0 : i1 to i32
    %c0_i32_0 = arith.constant 0 : i32
    %2 = arith.cmpi ne, %1, %c0_i32_0 : i32
    scf.if %2 {
      %c0_47 = arith.constant 0 : index
      %c0_48 = arith.constant 0 : index
      %72 = vector.load %arg9[%c0_47, %c0_48] : memref<1x32xf32, #tpu.memory_space<vmem>>, vector<1x32xf32>
      %73 = vector.shape_cast %72 : vector<1x32xf32> to vector<1x32xf32>
      %74 = vector.broadcast %73 : vector<1x32xf32> to vector<8x32xf32>
      %c0_49 = arith.constant 0 : index
      %c0_50 = arith.constant 0 : index
      %c0_51 = arith.constant 0 : index
      %75 = vector.load %arg10[%c0_49, %c0_50, %c0_51] : memref<1x8x32xf32, #tpu.memory_space<vmem>>, vector<1x8x32xf32>
      %76 = vector.shape_cast %75 : vector<1x8x32xf32> to vector<8x32xf32>
      %77 = vector.shape_cast %74 : vector<8x32xf32> to vector<1x8x32xf32>
      tpu.vector_store %arg10[%c0_49, %c0_50, %c0_51], %77 {strides = array<i32>} : memref<1x8x32xf32, #tpu.memory_space<vmem>>, vector<1x8x32xf32>,
      %cst_52 = arith.constant 0.000000e+00 : f32
      %78 = vector.broadcast %cst_52 : f32 to vector<8x8xf32>
      %c0_53 = arith.constant 0 : index
      %c0_54 = arith.constant 0 : index
      %c0_55 = arith.constant 0 : index
      %79 = vector.load %arg11[%c0_53, %c0_54, %c0_55] : memref<1x8x8xf32, #tpu.memory_space<vmem>>, vector<1x8x8xf32>
      %80 = vector.shape_cast %79 : vector<1x8x8xf32> to vector<8x8xf32>
      %81 = vector.shape_cast %78 : vector<8x8xf32> to vector<1x8x8xf32>
      tpu.vector_store %arg11[%c0_53, %c0_54, %c0_55], %81 {strides = array<i32>} : memref<1x8x8xf32, #tpu.memory_space<vmem>>, vector<1x8x8xf32>,
    } else {
    }
    %c0 = arith.constant 0 : index
    %c0_1 = arith.constant 0 : index
    %c0_2 = arith.constant 0 : index
    %3 = vector.load %arg6[%c0, %c0_1, %c0_2] : memref<1x8x32xf32, #tpu.memory_space<vmem>>, vector<1x8x32xf32>
    %4 = vector.shape_cast %3 : vector<1x8x32xf32> to vector<8x32xf32>
    %c0_3 = arith.constant 0 : index
    %c0_4 = arith.constant 0 : index
    %c0_5 = arith.constant 0 : index
    %5 = vector.load %arg7[%c0_3, %c0_4, %c0_5] : memref<1x32x8xf32, #tpu.memory_space<vmem>>, vector<1x32x8xf32>
    %6 = vector.shape_cast %5 : vector<1x32x8xf32> to vector<32x8xf32>
    %7 = math.absf %4 : vector<8x32xf32>
    %cst = arith.constant dense<0.000000e+00> : vector<8xf32>
    %8 = vector.multi_reduction <add>, %7, %cst [1] : vector<8x32xf32> to vector<8xf32>
    %9 = vector.shape_cast %8 : vector<8xf32> to vector<8x1xf32>
    %cst_6 = arith.constant 9.99999996E-13 : f32
    %10 = vector.broadcast %cst_6 : f32 to vector<8x1xf32>
    %11 = arith.maximumf %9, %10 : vector<8x1xf32>
    %12 = math.absf %6 : vector<32x8xf32>
    %cst_7 = arith.constant dense<0.000000e+00> : vector<8xf32>
    %13 = vector.multi_reduction <add>, %12, %cst_7 [0] : vector<32x8xf32> to vector<8xf32>
    %14 = vector.shape_cast %13 : vector<8xf32> to vector<1x8xf32>
    %cst_8 = arith.constant 9.99999996E-13 : f32
    %15 = vector.broadcast %cst_8 : f32 to vector<1x8xf32>
    %16 = arith.maximumf %14, %15 : vector<1x8xf32>
    %17 = vector.broadcast %11 : vector<8x1xf32> to vector<8x32xf32>
    %18 = arith.divf %4, %17 : vector<8x32xf32>
    %19 = vector.broadcast %16 : vector<1x8xf32> to vector<32x8xf32>
    %20 = arith.divf %6, %19 : vector<32x8xf32>
    %cst_9 = arith.constant dense<0.000000e+00> : vector<8x8xf32>
    %21 = tpu.matmul %18, %20, %cst_9 {dimension_numbers = #tpu.dot_dimension_numbers<[1], [0], [0], [1], [0, 0, 1, 1], [], []>} : vector<8x32xf32>, vector<32x8xf32>, vector<8x8xf32> -> vector<8x8xf32>
    %cst_10 = arith.constant dense<0xFF800000> : vector<8xf32>
    %22 = vector.multi_reduction <maximumf>, %21, %cst_10 [1] : vector<8x8xf32> to vector<8xf32>
    %23 = vector.shape_cast %22 : vector<8xf32> to vector<8x1xf32>
    %24 = vector.broadcast %23 : vector<8x1xf32> to vector<8x8xf32>
    %25 = arith.subf %21, %24 : vector<8x8xf32>
    %26 = math.exp %25 : vector<8x8xf32>
    %cst_11 = arith.constant dense<0.000000e+00> : vector<8xf32>
    %27 = vector.multi_reduction <add>, %26, %cst_11 [1] : vector<8x8xf32> to vector<8xf32>
    %28 = vector.shape_cast %27 : vector<8xf32> to vector<8x1xf32>
    %cst_12 = arith.constant 1.000000e+00 : f32
    %29 = vector.broadcast %cst_12 : f32 to vector<8x1xf32>
    %30 = arith.divf %29, %28 : vector<8x1xf32>
    %31 = vector.broadcast %30 : vector<8x1xf32> to vector<8x8xf32>
    %32 = arith.mulf %26, %31 : vector<8x8xf32>
    %c0_13 = arith.constant 0 : index
    %c0_14 = arith.constant 0 : index
    %c0_15 = arith.constant 0 : index
    %c0_16 = arith.constant 0 : index
    %33 = vector.load %arg3[%c0_13, %c0_14, %c0_15, %c0_16] : memref<1x1x8x8xbf16, #tpu.memory_space<vmem>>, vector<1x1x8x8xbf16>
    %34 = vector.shape_cast %33 : vector<1x1x8x8xbf16> to vector<8x8xbf16>
    %c0_17 = arith.constant 0 : index
    %c0_18 = arith.constant 0 : index
    %c0_19 = arith.constant 0 : index
    %c0_20 = arith.constant 0 : index
    %35 = vector.load %arg4[%c0_17, %c0_18, %c0_19, %c0_20] : memref<1x1x8x8xbf16, #tpu.memory_space<vmem>>, vector<1x1x8x8xbf16>
    %36 = vector.shape_cast %35 : vector<1x1x8x8xbf16> to vector<8x8xbf16>
    %cst_21 = arith.constant dense<0.000000e+00> : vector<8x8xf32>
    %37 = tpu.matmul %34, %36, %cst_21 {dimension_numbers = #tpu.dot_dimension_numbers<[1], [1], [0], [0], [0, 0, 1, 0], [], []>} : vector<8x8xbf16>, vector<8x8xbf16>, vector<8x8xf32> -> vector<8x8xf32>
    %38 = arith.mulf %37, %32 : vector<8x8xf32>
    %cst_22 = arith.constant dense<0xFF800000> : vector<8xf32>
    %39 = vector.multi_reduction <maximumf>, %38, %cst_22 [1] : vector<8x8xf32> to vector<8xf32>
    %40 = vector.shape_cast %39 : vector<8xf32> to vector<8x1xf32>
    %41 = vector.broadcast %40 : vector<8x1xf32> to vector<8x8xf32>
    %42 = arith.subf %38, %41 : vector<8x8xf32>
    %43 = math.exp %42 : vector<8x8xf32>
    %cst_23 = arith.constant dense<0.000000e+00> : vector<8xf32>
    %44 = vector.multi_reduction <add>, %43, %cst_23 [1] : vector<8x8xf32> to vector<8xf32>
    %45 = vector.shape_cast %44 : vector<8xf32> to vector<8x1xf32>
    %cst_24 = arith.constant 1.000000e+00 : f32
    %46 = vector.broadcast %cst_24 : f32 to vector<8x1xf32>
    %47 = arith.divf %46, %45 : vector<8x1xf32>
    %48 = vector.broadcast %47 : vector<8x1xf32> to vector<8x8xf32>
    %49 = arith.mulf %43, %48 : vector<8x8xf32>
    %c0_25 = arith.constant 0 : index
    %c0_26 = arith.constant 0 : index
    %c0_27 = arith.constant 0 : index
    %50 = vector.load %arg11[%c0_25, %c0_26, %c0_27] : memref<1x8x8xf32, #tpu.memory_space<vmem>>, vector<1x8x8xf32>
    %51 = vector.shape_cast %50 : vector<1x8x8xf32> to vector<8x8xf32>
    %cst_28 = arith.constant 2.500000e-01 : f32
    %52 = vector.broadcast %cst_28 : f32 to vector<8x8xf32>
    %53 = arith.mulf %49, %52 : vector<8x8xf32>
    %54 = arith.addf %51, %53 : vector<8x8xf32>
    %c0_29 = arith.constant 0 : index
    %c0_30 = arith.constant 0 : index
    %c0_31 = arith.constant 0 : index
    %55 = vector.load %arg11[%c0_29, %c0_30, %c0_31] : memref<1x8x8xf32, #tpu.memory_space<vmem>>, vector<1x8x8xf32>
    %56 = vector.shape_cast %55 : vector<1x8x8xf32> to vector<8x8xf32>
    %57 = vector.shape_cast %54 : vector<8x8xf32> to vector<1x8x8xf32>
    tpu.vector_store %arg11[%c0_29, %c0_30, %c0_31], %57 {strides = array<i32>} : memref<1x8x8xf32, #tpu.memory_space<vmem>>, vector<1x8x8xf32>,
    %58 = arith.truncf %49 : vector<8x8xf32> to vector<8x8xbf16>
    %c0_32 = arith.constant 0 : index
    %c0_33 = arith.constant 0 : index
    %c0_34 = arith.constant 0 : index
    %c0_35 = arith.constant 0 : index
    %59 = vector.load %arg5[%c0_32, %c0_33, %c0_34, %c0_35] : memref<1x1x8x8xbf16, #tpu.memory_space<vmem>>, vector<1x1x8x8xbf16>
    %60 = vector.shape_cast %59 : vector<1x1x8x8xbf16> to vector<8x8xbf16>
    %cst_36 = arith.constant dense<0.000000e+00> : vector<8x8xf32>
    %61 = tpu.matmul %58, %60, %cst_36 {dimension_numbers = #tpu.dot_dimension_numbers<[1], [0], [0], [1], [0, 0, 1, 1], [], []>} : vector<8x8xbf16>, vector<8x8xbf16>, vector<8x8xf32> -> vector<8x8xf32>
    %c0_37 = arith.constant 0 : index
    %c0_38 = arith.constant 0 : index
    %c0_39 = arith.constant 0 : index
    %62 = vector.load %arg10[%c0_37, %c0_38, %c0_39] : memref<1x8x32xf32, #tpu.memory_space<vmem>>, vector<1x8x32xf32>
    %63 = vector.shape_cast %62 : vector<1x8x32xf32> to vector<8x32xf32>
    %64 = arith.truncf %61 : vector<8x8xf32> to vector<8x8xbf16>
    %c0_40 = arith.constant 0 : index
    %c0_41 = arith.constant 0 : index
    %c0_42 = arith.constant 0 : index
    %65 = vector.load %arg8[%c0_40, %c0_41, %c0_42] : memref<1x8x32xbf16, #tpu.memory_space<vmem>>, vector<1x8x32xbf16>
    %66 = vector.shape_cast %65 : vector<1x8x32xbf16> to vector<8x32xbf16>
    %cst_43 = arith.constant dense<0.000000e+00> : vector<8x32xf32>
    %67 = tpu.matmul %64, %66, %cst_43 {dimension_numbers = #tpu.dot_dimension_numbers<[1], [0], [0], [1], [0, 0, 1, 1], [], []>} : vector<8x8xbf16>, vector<8x32xbf16>, vector<8x32xf32> -> vector<8x32xf32>
    %68 = arith.addf %63, %67 : vector<8x32xf32>
    %c0_44 = arith.constant 0 : index
    %c0_45 = arith.constant 0 : index
    %c0_46 = arith.constant 0 : index
    %69 = vector.load %arg10[%c0_44, %c0_45, %c0_46] : memref<1x8x32xf32, #tpu.memory_space<vmem>>, vector<1x8x32xf32>
    %70 = vector.shape_cast %69 : vector<1x8x32xf32> to vector<8x32xf32>
    %71 = vector.shape_cast %68 : vector<8x32xf32> to vector<1x8x32xf32>
    tpu.vector_store %arg10[%c0_44, %c0_45, %c0_46], %71 {strides = array<i32>} : memref<1x8x32xf32, #tpu.memory_space<vmem>>, vector<1x8x32xf32>,
    return
  }
  func.func @transform_0(%arg0: i32, %arg1: i32, %arg2: i32) -> (i32, i32, i32, i32) {
    %c0_i32 = arith.constant 0 : i32
    %c0_i32_0 = arith.constant 0 : i32
    return %arg0, %arg2, %arg1, %c0_i32 : i32, i32, i32, i32
  }
  func.func @transform_1(%arg0: i32, %arg1: i32, %arg2: i32) -> (i32, i32, i32, i32) {
    %c0_i32 = arith.constant 0 : i32
    %c0_i32_0 = arith.constant 0 : i32
    %c0_i32_1 = arith.constant 0 : i32
    return %arg0, %arg2, %c0_i32, %c0_i32_0 : i32, i32, i32, i32
  }
  func.func @transform_2(%arg0: i32, %arg1: i32, %arg2: i32) -> (i32, i32, i32, i32) {
    %c0_i32 = arith.constant 0 : i32
    %c0_i32_0 = arith.constant 0 : i32
    %c0_i32_1 = arith.constant 0 : i32
    return %arg0, %arg2, %c0_i32, %c0_i32_0 : i32, i32, i32, i32
  }
  func.func @transform_3(%arg0: i32, %arg1: i32, %arg2: i32) -> (i32, i32, i32) {
    %c4_i32 = arith.constant 4 : i32
    %0 = arith.muli %arg0, %c4_i32 : i32
    %1 = arith.addi %0, %arg2 : i32
    %c2_i32 = arith.constant 2 : i32
    %c0_i32 = arith.constant 0 : i32
    %2 = arith.cmpi eq, %c2_i32, %c0_i32 : i32
    %c1_i32 = arith.constant 1 : i32
    %3 = arith.select %2, %c1_i32, %c2_i32 : i32
    %4 = arith.remsi %1, %3 : i32
    %c0_i32_0 = arith.constant 0 : i32
    %5 = arith.cmpi ne, %4, %c0_i32_0 : i32
    %c0_i32_1 = arith.constant 0 : i32
    %6 = arith.cmpi slt, %4, %c0_i32_1 : i32
    %c0_i32_2 = arith.constant 0 : i32
    %7 = arith.cmpi slt, %3, %c0_i32_2 : i32
    %8 = arith.xori %6, %7 : i1
    %9 = arith.andi %8, %5 : i1
    %10 = arith.addi %4, %3 : i32
    %11 = arith.select %9, %10, %4 : i32
    %c0_i32_3 = arith.constant 0 : i32
    %c0_i32_4 = arith.constant 0 : i32
    return %11, %arg1, %c0_i32_3 : i32, i32, i32
  }
  func.func @transform_4(%arg0: i32, %arg1: i32, %arg2: i32) -> (i32, i32, i32) {
    %c4_i32 = arith.constant 4 : i32
    %0 = arith.muli %arg0, %c4_i32 : i32
    %1 = arith.addi %0, %arg2 : i32
    %c2_i32 = arith.constant 2 : i32
    %c0_i32 = arith.constant 0 : i32
    %2 = arith.cmpi eq, %c2_i32, %c0_i32 : i32
    %c1_i32 = arith.constant 1 : i32
    %3 = arith.select %2, %c1_i32, %c2_i32 : i32
    %4 = arith.remsi %1, %3 : i32
    %c0_i32_0 = arith.constant 0 : i32
    %5 = arith.cmpi ne, %4, %c0_i32_0 : i32
    %c0_i32_1 = arith.constant 0 : i32
    %6 = arith.cmpi slt, %4, %c0_i32_1 : i32
    %c0_i32_2 = arith.constant 0 : i32
    %7 = arith.cmpi slt, %3, %c0_i32_2 : i32
    %8 = arith.xori %6, %7 : i1
    %9 = arith.andi %8, %5 : i1
    %10 = arith.addi %4, %3 : i32
    %11 = arith.select %9, %10, %4 : i32
    %c0_i32_3 = arith.constant 0 : i32
    %c0_i32_4 = arith.constant 0 : i32
    %c0_i32_5 = arith.constant 0 : i32
    return %11, %c0_i32_3, %c0_i32_4 : i32, i32, i32
  }
  func.func @transform_5(%arg0: i32, %arg1: i32, %arg2: i32) -> (i32, i32, i32) {
    %c0_i32 = arith.constant 0 : i32
    %c0_i32_0 = arith.constant 0 : i32
    %c0_i32_1 = arith.constant 0 : i32
    return %arg2, %c0_i32, %c0_i32_0 : i32, i32, i32
  }
  func.func @transform_6(%arg0: i32, %arg1: i32, %arg2: i32) -> (i32, i32) {
    %c0_i32 = arith.constant 0 : i32
    %c0_i32_0 = arith.constant 0 : i32
    %c0_i32_1 = arith.constant 0 : i32
    return %c0_i32, %c0_i32_0 : i32, i32
  }
  func.func @transform_7(%arg0: i32, %arg1: i32, %arg2: i32) -> (i32, i32, i32) {
    %c0_i32 = arith.constant 0 : i32
    %c0_i32_0 = arith.constant 0 : i32
    return %arg0, %arg1, %c0_i32 : i32, i32, i32
  }
  func.func @transform_8(%arg0: i32, %arg1: i32, %arg2: i32) -> (i32, i32, i32) {
    %c0_i32 = arith.constant 0 : i32
    %c0_i32_0 = arith.constant 0 : i32
    return %arg0, %arg1, %c0_i32 : i32, i32, i32
  }
}

</mosaic_0001>

<bundles_post_ra>
// kernel: mha_custom_attn_forward.2
= control target key start
LH: loop header
LB: loop body
LE: loop exit
PB: predicated region body
PF: predicated region fallthrough
CT: control target
= control target key end

     0   :  { %v118_v0 = vmov 0.0   ;;  %vm119_vm0 = vmmov 0   ;;  %vm45_vm1 = vcmask 261120   ;;  %vm90_vm2 = vcmask 785408   ;;  %s158_s1 = inlined_call_operand.vmem [shape: bf16[32,96], index: 1, kind: input, shape index: {}]   ;;  %s159_s0 = inlined_call_operand.vmem [shape: bf16[16,32], index: 0, kind: input, shape index: {}]   ;;  %s160_s2 = inlined_call_operand.vmem [shape: f32[1,96], index: 2, kind: input, shape index: {}]   ;;  %s161_s3 = inlined_call_operand.vmem [shape: f32[16,96], index: 3, kind: output, shape index: {}]  }
   0x1   :  { %105 = vmatprep.subr.bf16.mxu0 %v118_v0  ;;  %v115_v1 = vld [vmem:[%s158_s1 + $0x8] sm:$0xff]   ;;  %109 = vmatprep.mubr.msk.bf16.mxu0 %vm119_vm0, %v118_v0  ;;  %v116_v2 = vld [vmem:[%s158_s1] sm:$0xff]  }
   0x2   :  { %106 = vmatpush3.bf16.msra.mxu0 %v115_v1  ;;  %v117_v3 = vld [vmem:[%s159_s0] sm:$0xff]  }
   0x3   :  { %107 = vmatprep.subr.bf16.mxu0 %v118_v0  ;;  %v97_v4 = vld [vmem:[%s160_s2] ss:$0 sm:$0xff] }
   0x6   :  { %108 = vmatpush3.bf16.msra.mxu0 %v116_v2 }
   0x9   :  { %110 = vmatmul.mubr.msk.bf16.vlgmr.msra.gmra.mxu0 %vm45_vm1, %v117_v3 }
  0xc9   :  { %v83_v5 = vpop.f32.mrf.mxu0 }
  0xca   :  { %v84_v6 = vadd.f32 %v97_v4, %v83_v5 }
  0xcb   :  { %v111_v7 = vpop.f32.mrf.mxu0 }
  0xcc   :  { %91 = vst.msk [vmem:[%s161_s3] sm:$0xff] %vm90_vm2, %v84_v6 }
  0xcd   :  { %v86_v8 = vpop.f32.mrf.mxu0 }
  0xce   :  { %v87_v9 = vadd.f32 %v97_v4, %v86_v8 }
  0xcf   :  { %v112_v10 = vpop.f32.mrf.mxu0 }
  0xd0   :  { %92 = vst.msk [vmem:[%s161_s3 + $0x8] sm:$0xff] %vm90_vm2, %v87_v9 }

// kernel: mha_custom_attn_forward.3
= control target key start
LH: loop header
LB: loop body
LE: loop exit
PB: predicated region body
PF: predicated region fallthrough
CT: control target
= control target key end

     0   :  { %s1733_s0 = inlined_call_operand.vmem [shape: bf16[2,4,8,8], index: 0, kind: input, shape index: {}]   ;;  %s1734_s1 = inlined_call_operand.vmem [shape: bf16[2,4,8,8], index: 1, kind: input, shape index: {}]   ;;  %s1735_s2 = inlined_call_operand.vmem [shape: bf16[2,4,8,8], index: 2, kind: input, shape index: {}]   ;;  %s1736_s3 = inlined_call_operand.vmem [shape: f32[2,8,32], index: 3, kind: input, shape index: {}]   ;;  %s1737_s4 = inlined_call_operand.vmem [shape: f32[2,32,8], index: 4, kind: input, shape index: {}]   ;;  %s1738_s5 = inlined_call_operand.vmem [shape: bf16[4,8,32], index: 5, kind: input, shape index: {}]   ;;  %s1739_s6 = inlined_call_operand.vmem [shape: f32[1,32], index: 6, kind: input, shape index: {}]   ;;  %s1740_s7 = inlined_call_operand.vmem [shape: f32[2,8,32], index: 7, kind: output, shape index: {0}]   ;;  %s1741_s8 = inlined_call_operand.hbm [shape: f32[2,8,8], index: 8, kind: output, shape index: {1}]  }
   0x1   :  { %1756 = sst [smem:[#allocation17_spill]] %s1741_s8 }
   0x2   :  { %14 = vsyncpa [#allocation3], 0 }
   0x3   :  { %16 = vsyncpa [#allocation3 + $0x1], 0  ;;  %s1527_s27 = smov 0   ;;  %s1529_s28 = smov 0  }
   0x4   :  { %s1531_s29 = smov 0   ;;  %s1533_s30 = smov 0  }
   0x5   :  { %s1535_s9 = smov 0   ;;  %s1537_s10 = smov 0  }
   0x6   :  { %s1539_s11 = smov 0   ;;  %s1541_s12 = smov 0  }
   0x7 LB: > { %1757 = sst [smem:[#allocation5_spill]] %s1448_s27  ;;  %s1206_s13 = sadd.s32 4294967295, %s1476_s12   ;;  %s1476_s12 = sphi %s1541_s12, %s22_s12   ;;  %s1472_s11 = sphi %s1539_s11, %s1786_s11   ;;  %s1468_s10 = sphi %s1537_s10, %s1785_s10   ;;  %s1464_s9 = sphi %s1535_s9, %s1784_s9   ;;  %s1460_s30 = sphi %s1533_s30, %s1783_s30   ;;  %s1456_s29 = sphi %s1531_s29, %s1782_s29   ;;  %s1452_s28 = sphi %s1529_s28, %s1781_s28   ;;  %s1448_s27 = sphi %s1527_s27, %s1780_s27  }
   0x8   : > { %1758 = sst [smem:[#allocation6_spill]] %s1452_s28  ;;  %s1207_s14 = sadd.s32 4294967294, %s1476_s12  }
   0x9   : > { %1759 = sst [smem:[#allocation7_spill]] %s1456_s29  ;;  %s34_s15 = sadd.s32 1, %s1468_s10 }
   0xa   : > { %1760 = sst [smem:[#allocation8_spill]] %s1464_s9  ;;  %p35_p0 = scmp.ge.s32.totalorder %s34_s15, 4 }
   0xb   : > { %1761 = sst [smem:[#allocation9_spill]] %s1468_s10  ;;  %s41_s16 = sadd.s32 1, %s1472_s11 }
   0xc   : > { %1762 = sst [smem:[#allocation10_spill]] %s1472_s11  ;;  %p331_p1 = scmp.ne.s32.totalorder %s1456_s29, %s1452_s28 }
   0xd   : > { %1763 = sst [smem:[#allocation11_spill]] %s1476_s12  ;;  %p332_p2 = scmp.eq.s32.totalorder %s1206_s13, 7 }
   0xe   : > { %s1788_s15 = smov (%p35_p0, %s34_s15), 0  ;;  %s1790_s16 = smov (!%p35_p0, %s41_s16), %s1472_s11 }
   0xf   : > { %1764 = sst [smem:[#allocation12_spill]] %s1788_s15  ;;  %p1576_p3 = por %p332_p2, %p331_p1 }
  0x10   : > { %p337_p4 = scmp.ne.s32.totalorder %s1452_s28, %s1448_s27  ;;  %p43_p5 = scmp.ge.s32.totalorder %s1790_s16, 2 }
  0x11   : > { %s1765_s17 = scalar_select %p1576_p3, 1, 0 }
  0x12   : > { %p338_p6 = scmp.eq.s32.totalorder %s1207_s14, 7  ;;  %p1226_p7 = scmp.ge.s32.totalorder %s1476_s12, 1 }
  0x13   : > { %1766 = sst [smem:[#allocation13_spill]] %s1765_s17  ;;  %p476_p8 = scmp.lt.s32.totalorder %s1476_s12, 9 }
  0x14   : > { %s1792_s16 = smov (%p43_p5, %s1790_s16), 0  ;;  %p1586_p9 = por %p338_p6, %p337_p4 }
  0x15   : > { %1767 = sst [smem:[#allocation14_spill]] %s1792_s16  ;;  %p477_p10 = pnand %p1226_p7, %p476_p8 }
  0x16   : > { %s1768_s18 = scalar_select %p1586_p9, 1, 0 }
  0x17   : > { %s316_s19 = ssub.s32 %s1472_s11, %s1792_s16  ;;  %s321_s20 = sadd.s32 1, %s1456_s29 }
  0x18   : > { %1769 = sst [smem:[#allocation15_spill]] %s1768_s18  ;;  %p319_p11 = scmp.eq.s32.totalorder %s316_s19, 0 }
  0x19   : > { %480 = sbr.rel (%p477_p10) target bundleno = 1426 (0x592), region = 48  ;;  %s1745_s22 = sand.u32 (!%p477_p10), 1, %s1452_s28  }
  0x1a   : > { %s1594_s21 = scalar_select %p319_p11, %s1456_s29, %s321_s20  }
  0x1b   : > { %p583_p12 = scmp.lt.s32.totalorder (!%p477_p10), %s1464_s9, 1  ;;  %s1600_s23 = sshll.u32 (!%p477_p10), %s1745_s22, 3 }
  0x1c   : > { %1770 = sst [smem:[#allocation16_spill]] %s1594_s21  ;;  %p585_p13 = scmp.lt.s32.totalorder (!%p477_p10), %s1460_s30, 3 }
  0x1d   : > { %s1234_s24 = sshll.u32 (!%p477_p10), %s1464_s9, 2  ;;  %p1247_p4 = scmp.ne.s32.totalorder (!%p477_p10), %s1460_s30, 0 }
  0x1e   : > { %s584_s25 = scalar_select %p583_p12, %s1464_s9, 1 }
  0x1f   : > { %s586_s26 = scalar_select %p585_p13, %s1460_s30, 3 }
  0x20   : > { %s1228_s13 = sshll.u32 %s584_s25, 2  ;;  %s611_s14 = sadd.s32 %s1460_s30, %s1234_s24 }
  0x21   : > { %s591_s19 = sadd.s32 %s1228_s13, %s586_s26  ;;  %p612_p0 = scmp.lt.s32.totalorder %s611_s14, 0 }
  0x22   : > { %s1607_s20 = sshll.u32 %s591_s19, 2  ;;  %s613_s16 = ssub.s32 0, %s611_s14 }
  0x23   : > { %s601_s29 = scalar_lea.vmem %s1734_s1, %s1607_s20  ;;  %s609_s24 = scalar_lea.vmem %s1735_s2, %s1607_s20 }
  0x24   : > { %s1235_s13 = smin.u32 %s613_s16, %s611_s14  ;;  %s1245_s19 = sshll.u32 %s586_s26, 2 }
  0x25   : > { %s615_s12 = sand.u32 1, %s1235_s13   ;;  %s1624_s9 = scalar_lea.vmem %s1738_s5, %s1245_s19 }
  0x26   : > { %s616_s8 = ssub.s32 0, %s615_s12  ;;  %s1246_s11 = sshll.u32 %s584_s25, 3 }
  0x27   : > { %s1794_s8 = smov (!%p612_p0, %s616_s8), %s615_s12  ;;  %s1629_s10 = scalar_lea.vmem %s1740_s7, %s1246_s11 }
  0x28   : > { %p1237_p1 = scmp.lt.s32.totalorder %s1794_s8, 0  ;;  %s622_s15 = sadd.s32 2, %s1794_s8 }
  0x29   : > { %s1638_s25 = scalar_lea.vmem [#allocation2], %s1600_s23 }
  0x2a   : > { %s1796_s15 = smov (!%p1237_p1, %s622_s15), %s1794_s8 }
  0x2b   : > { %p624_p2 = scmp.lt.s32.totalorder %s1796_s15, 1  ;;  %693 = sbr.rel (%p1247_p4) target bundleno = 51 (0x33), region = 52 }
  0x2d   : > { %s1798_s15 = smov (!%p624_p2, %s1796_s15), 1 }
  0x2e   : > { %s1238_s27 = sshll.u32 %s1798_s15, 3  ;;  %s1257_s16 = sshll.u32 %s1798_s15, 5 }
  0x2f   : > { %s630_s28 = scalar_lea.vmem %s1736_s3, %s1238_s27  ;;  %s663_s12 = scalar_lea.vmem %s1737_s4, %s1257_s16 }
  0x30   : > { %v1248_v0 = vld [vmem:[%s1739_s6] ss:$0 sm:$0xff]  ;;  %vm701_vm0 = vcmask 261120   ;;  %vm703_vm1 = vcmask 64512   ;;  %v1478_v1 = vmov 0.0  }
  0x31   : > { %702 = vst.msk [vmem:[%s1629_s10] sm:$0xff] %vm701_vm0, %v1248_v0 }
  0x32   : > { %704 = vst.msk [vmem:[%s1638_s25] sm:$0xff] %vm703_vm1, %v1478_v1 }
  0x33 PF: > { %v705_v2 = vld [vmem:[%s630_s28] sm:$0xff]  ;;  %vm711_vm2 = vcmask 261120   ;;  %v707_v4 = vld [vmem:[%s663_s12 + $0x8] sm:$0xff]  ;;  %vm720_vm3 = vcmask 64512   ;;  %v708_v6 = vld [vmem:[%s663_s12 + $0x10] sm:$0xff]  ;;  %v1479_v23 = vmov 0.0   ;;  %s1771_s15 = scalar_lea.vmem %s1733_s0, %s1607_s20 }
  0x34   : > { %v706_v3 = vld [vmem:[%s663_s12] sm:$0xff]  ;;  %v710_v5 = vand.u32 2147483647, %v705_v2  ;;  %v709_v7 = vld [vmem:[%s663_s12 + $0x18] sm:$0xff]  ;;  %v717_v9 = vand.u32 2147483647, %v707_v4  ;;  %1269 = vmatprep.subr.mxu0 %v1479_v23  ;;  %1280 = vmatprep.subr.bf16.mxu1 %v1479_v23 }
  0x35   : > { %v716_v8 = vand.u32 2147483647, %v706_v3  ;;  %v718_v10 = vand.u32 2147483647, %v708_v6  ;;  %v719_v11 = vand.u32 2147483647, %v709_v7 }
  0x36   : > { %v712_v12 = vsel %vm711_vm2, %v710_v5, 0.0  ;;  %v722_v14 = vsel %vm720_vm3, %v717_v9, 0.0  ;;  %vm1480_vm4 = vmmov 0   ;;  %v828_v37 = vld [vmem:[%s601_s29] sm:$0xf]  ;;  %vm897_vm5 = vcmask 1043456  }
  0x37   : > { %v721_v13 = vsel %vm720_vm3, %v716_v8, 0.0  ;;  %713 = vadd.xlane.f32.xlu0 %v712_v12  ;;  %v724_v15 = vsel %vm720_vm3, %v718_v10, 0.0  ;;  %v726_v17 = vsel %vm720_vm3, %v719_v11, 0.0  ;;  %1277 = vmatprep.mubr.msk.f32.mxu0 %vm1480_vm4, %v1479_v23  ;;  %v833_v38 = vsel %vm720_vm3, %v828_v37, 0  ;;  %v827_v39 = vld [vmem:[%s1771_s15] sm:$0xf] }
  0x38   : > { %v723_v16 = vadd.f32 %v722_v14, %v721_v13  ;;  %1282 = vmatprep.mubr.msk.bf16.mxu1 %vm1480_vm4, %v1479_v23  ;;  %1281 = vmatpush3.bf16.xpose.msra.mxu1 %v833_v38  ;;  %v893_v62 = vld [vmem:[%s609_s24] sm:$0xf]  ;;  %s1772_s22 = sld [smem:[#allocation8_spill]]  ;;  %s1017_s24 = sshll.u32 %s1638_s25, 4  ;;  %s1018_s24 = int_to_ptr.vmem [resolvable:$true] %s1017_s24 }
  0x39   : > { %1292 = vmatprep.subr.bf16.mxu1 %v1479_v23  ;;  %v899_v63 = vsel %vm897_vm5, %v893_v62, 0  ;;  %v943_v0 = vld [vmem:[%s1624_s9] sm:$0xf]  ;;  %s1773_s27 = sld [smem:[#allocation6_spill]]  ;;  %s1384_s12 = scalar_lea.vmem %s1018_s24, 128 }
  0x3a   : > { %v725_v18 = vadd.f32 %v724_v15, %v723_v16  ;;  %v948_v1 = vsel %vm897_vm5, %v943_v0, 0  ;;  %v888_v5 = vld [vmem:[%s1638_s25] sm:$0xff]  ;;  %s1775_s26 = sld [smem:[#allocation17_spill]]  ;;  %p1385_p5 = scmp.ne.s32.totalorder %s1018_s24, %s1384_s12 }
  0x3b   : > { %s1481_s13 = smov [#allocation2]  }
  0x3c   : > { %v727_v19 = vadd.f32 %v726_v17, %v725_v18  ;;  %p1386_p6 = pnand %p1385_p5, %p1576_p3  ;;  %s1388_s19 = sshll.u32 %s1481_s13, 4  ;;  %s1389_s19 = int_to_ptr.vmem [resolvable:$false] %s1388_s19 }
  0x3d   : > { %s1390_s8 = scalar_lea.vmem %s1389_s19, 256  ;;  %p1391_p8 = scmp.lt.s32.totalorder %s1018_s24, %s1389_s19 }
  0x3e   : > { %v728_v20 = vrot.slane %v727_v19, 4  ;;  %s1254_s9 = sshll.u32 %s1772_s22, 7  ;;  %p1387_p7 = pneg %p1386_p6 }
  0x3f   : > { %1283 = vmatmul.mubr.msk.bf16.vlgmr.msra.gmra.mxu1 %vm720_vm3, %v827_v39  ;;  %s1776_s17 = sand.u32 1, %s1773_s27   ;;  %p1392_p10 = scmp.lt.s32.totalorder %s1390_s8, %s1384_s12 }
  0x40   : > { %v729_v21 = vadd.f32 %v728_v20, %v727_v19  ;;  %1294 = vmatprep.mubr.msk.bf16.mxu1 %vm1480_vm4, %v1479_v23  ;;  %1293 = vmatpush3.bf16.msra.mxu1 %v948_v1  ;;  %s1015_s28 = scalar_lea.hbm %s1775_s26, %s1254_s9  ;;  %s1000_s14 = scalar_lea.sflag [#allocation3], %s1776_s17 }
  0x41   : > { %p1393_p11 = por %p1392_p10, %p1391_p8 }
  0x42   : > { %v730_v22 = vrot.slane %v729_v21, 2 }
  0x43   : > { %p1394_p12 = pnand %p1393_p11, %p1387_p7 }
  0x44   : > { %v731_v24 = vadd.f32 %v730_v22, %v729_v21 }
  0x46   : > { %v732_v25 = vrot.slane %v731_v24, 1 }
  0x48   : > { %v733_v26 = vadd.f32 %v732_v25, %v731_v24 }
  0x4a   : > { %v734_v27 = vmax.f32 %v733_v26, 1e-12 }
  0x4c   : > { %1372 = vrcp.f32 %v734_v27 }
  0x59   : > { %v1373_v28 = vpop.eup %1372 }
  0x5a   : > { %v741_v29 = vmul.f32 %v1373_v28, %v709_v7  ;;  %v740_v30 = vmul.f32 %v1373_v28, %v708_v6  ;;  %v739_v31 = vmul.f32 %v1373_v28, %v707_v4  ;;  %v738_v32 = vmul.f32 %v1373_v28, %v706_v3 }
  0x5c   : > { %1270 = vmatpush3.msra.mxu0 %v741_v29 }
  0x5d   : > { %1271 = vmatprep.subr.mxu0 %v1479_v23 }
  0x5e   : > { %1272 = vmatpush3.msra.mxu0 %v740_v30 }
  0x5f   : > { %1273 = vmatprep.subr.mxu0 %v1479_v23 }
  0x60   : > { %1274 = vmatpush3.msra.mxu0 %v739_v31 }
  0x61   : > { %1275 = vmatprep.subr.mxu0 %v1479_v23 }
  0x62   : > { %1276 = vmatpush3.msra.mxu0 %v738_v32 }
  0x63   : > { %1286 = vmatprep.subr.bf16.mxu0 %v1479_v23 }
  0xc0   : > { %v714_v33 = vpop.xlane.xlu0 %713 }
  0xc1   : > { %v715_v34 = vmax.f32 %v714_v33, 1e-12 }
  0xc3   : > { %1374 = vrcp.f32 %v715_v34 }
  0xd0   : > { %v1375_v35 = vpop.eup %1374 }
  0xd1   : > { %v736_v36 = vmul.f32 %v1375_v35, %v705_v2 }
  0xd3   : > { %1278 = vmatmul.mubr.msk.f32.vlgmr.msra.gmra.mxu0 %vm711_vm2, %v736_v36 }
  0xd4   : > { %1288 = vmatprep.mubr.msk.bf16.mxu0 %vm1480_vm4, %v1479_v23  ;;  %1287 = vmatpush3.bf16.msra.mxu0 %v899_v63 }
  0xff   : > { %v869_v48 = vpop.f32.mrf.mxu1 }
 0x101   : > { %v1284_v49 = vpop.f32.mrf.mxu1 }
 0x103   : > { %v872_v50 = vpop.f32.mrf.mxu1 }
 0x105   : > { %v1285_v51 = vpop.f32.mrf.mxu1 }
 0x193   : > { %v811_v40 = vpop.f32.mrf.mxu0 }
 0x194   : > { %v815_v41 = vsel %vm720_vm3, %v811_v40, -inf }
 0x195   : > { %816 = vmax.xlane.f32.xlu0 %v815_v41  ;;  %v1279_v42 = vpop.f32.mrf.mxu0 }
 0x21e   : > { %v817_v43 = vpop.xlane.xlu0 %816 }
 0x21f   : > { %v818_v44 = vsub.f32 %v811_v40, %v817_v43 }
 0x221   : > { %v819_v45 = vmul.f32 1.442695, %v818_v44 }
 0x223   : > { %1376 = vpow2.f32 %v819_v45 }
 0x230   : > { %v1377_v46 = vpop.eup %1376 }
 0x231   : > { %v821_v47 = vsel %vm720_vm3, %v1377_v46, 0.0 }
 0x232   : > { %822 = vadd.xlane.f32.xlu1 %v821_v47 }
 0x2bb   : > { %v823_v52 = vpop.xlane.xlu1 %822 }
 0x2bc   : > { %1378 = vrcp.f32 %v823_v52 }
 0x2c9   : > { %v1379_v53 = vpop.eup %1378 }
 0x2ca   : > { %v826_v54 = vmul.f32 %v1379_v53, %v1377_v46 }
 0x2cc   : > { %v875_v55 = vmul.f32 %v869_v48, %v826_v54 }
 0x2ce   : > { %v876_v56 = vsel %vm720_vm3, %v875_v55, -inf }
 0x2cf   : > { %877 = vmax.xlane.f32.xlu1 %v876_v56 }
 0x358   : > { %v878_v57 = vpop.xlane.xlu1 %877 }
 0x359   : > { %v879_v58 = vsub.f32 %v875_v55, %v878_v57 }
 0x35b   : > { %v880_v59 = vmul.f32 1.442695, %v879_v58 }
 0x35d   : > { %1380 = vpow2.f32 %v880_v59 }
 0x36a   : > { %v1381_v60 = vpop.eup %1380 }
 0x36b   : > { %v882_v61 = vsel %vm720_vm3, %v1381_v60, 0.0 }
 0x36c   : > { %883 = vadd.xlane.f32.xlu0 %v882_v61 }
 0x3f5   : > { %v884_v2 = vpop.xlane.xlu0 %883 }
 0x3f6   : > { %1382 = vrcp.f32 %v884_v2 }
 0x403   : > { %v1383_v3 = vpop.eup %1382 }
 0x404   : > { %v887_v4 = vmul.f32 %v1383_v3, %v1381_v60 }
 0x406   : > { %v892_v6 = vpack.c.bf16 %v887_v4, %v887_v4  ;;  %v889_v7 = vmul.f32 0.25, %v887_v4 }
 0x408   : > { %1289 = vmatmul.mubr.msk.bf16.vlgmr.msra.gmra.mxu0 %vm720_vm3, %v892_v6  ;;  %v890_v8 = vadd.f32 %v889_v7, %v888_v5 }
 0x40a   : > { %891 = vst.msk [vmem:[%s1638_s25] sm:$0xff] %vm720_vm3, %v890_v8 }
 0x4c8   : > { %v935_v9 = vpop.f32.mrf.mxu0 }
 0x4c9   : > { %v942_v10 = vpack.c.bf16 %v935_v9, %v935_v9 }
 0x4ca   : > { %v1290_v11 = vpop.f32.mrf.mxu0 }
 0x4cb   : > { %1295 = vmatmul.mubr.msk.bf16.vlgmr.msra.gmra.mxu1 %vm720_vm3, %v942_v10 }
 0x4cc   : > { %v938_v12 = vpop.f32.mrf.mxu0 }
 0x4ce   : > { %v1291_v13 = vpop.f32.mrf.mxu0 }
 0x4cf   : > { %1397 = shalt.err (!%p1394_p12)
}
 0x4d0   : > { %s1398_s25 = scalar_lea.hbm %s1015_s28, 128  ;;  %s1402_s11 = scalar_lea.hbm %s1775_s26, 256 }
 0x4d1   : > { %p1399_p13 = scmp.ne.s32.totalorder %s1015_s28, %s1398_s25  ;;  %p1403_p2 = scmp.lt.s32.totalorder %s1015_s28, %s1775_s26 }
 0x4d2   : > { %p1404_p4 = scmp.lt.s32.totalorder %s1402_s11, %s1398_s25 }
 0x4d3   : > { %p1400_p0 = pnand %p1399_p13, %p1576_p3 }
 0x4d4   : > { %p1405_p5 = por %p1404_p4, %p1403_p2 }
 0x4d5   : > { %p1401_p1 = pneg %p1400_p0 }
 0x4d7   : > { %p1406_p6 = pnand %p1405_p5, %p1401_p1 }
 0x4d9   : > { %1409 = shalt.err (!%p1406_p6)
}
 0x4da   : > { %1298 = dma.vmem_to_hbm [thread:$0]  (%p1576_p3), %s1018_s24, 128, %s1015_s28, %s1000_s14   ;;  %v941_v14 = vld [vmem:[%s1629_s10] sm:$0xff] }
 0x58b   : > { %v984_v15 = vpop.f32.mrf.mxu1 }
 0x58c   : > { %v990_v16 = vadd.f32 %v984_v15, %v941_v14 }
 0x58d   : > { %v1296_v17 = vpop.f32.mrf.mxu1 }
 0x58e   : > { %991 = vst.msk [vmem:[%s1629_s10] sm:$0xff] %vm711_vm2, %v990_v16 }
 0x58f   : > { %v987_v18 = vpop.f32.mrf.mxu1 }
 0x591   : > { %v1297_v19 = vpop.f32.mrf.mxu1 }
 0x592 PF: > { %s1777_s21 = sld [smem:[#allocation11_spill]] }
 0x593   : > { %s1778_s22 = sld [smem:[#allocation5_spill]] }
 0x598   : > { %p1304_p7 = scmp.ge.s32.totalorder %s1777_s21, 2 }
 0x599   : > { %s1039_s9 = sand.u32 1, %s1778_s22  }
 0x59a   : > { %p1301_p8 = pnand %p1304_p7, %p1586_p9  ;;  %s1040_s20 = scalar_lea.sflag [#allocation3], %s1039_s9 }
 0x59c   : > { %p1302_p10 = pneg %p1301_p8 }
 0x59e   : > { %1443 = dma.done.wait (%p1302_p10), %s1040_s20, 128  }
 0x59f   : > { %1445 = vsyncadd (%p1302_p10), %s1040_s20, 4294967168  ;;  %s22_s12 = sadd.s32 1, %s1777_s21   ;;  %s1780_s27 = sld [smem:[#allocation6_spill]] }
 0x5a0   : > { %p19_p3 = scmp.ge.s32.totalorder %s22_s12, 10   ;;  %s1781_s28 = sld [smem:[#allocation7_spill]] }
 0x5a1   : > { %s1782_s29 = sld [smem:[#allocation16_spill]] }
 0x5a2   : > { %s1783_s30 = sld [smem:[#allocation9_spill]]  ;;  %21 = sbr.rel (!%p19_p3) target bundleno = 7 (0x7), region = 114 }
 0x5a3   : > { %s1784_s9 = sld [smem:[#allocation10_spill]] }
 0x5a4   : > { %s1785_s10 = sld [smem:[#allocation12_spill]] }
 0x5a5   : > { %s1786_s11 = sld [smem:[#allocation14_spill]] }
 0x5a7   :  { %1045 = vsyncpa [#allocation3], 1 }
 0x5a8   :  { %1047 = vsyncpa [#allocation3 + $0x1], 1 }

</bundles_post_ra>
